<compile_context>
chip_gen: v7x
topology: tpu7x:2x2x1
jax: 0.10.0
libtpu: 0.0.40
codegen_flags: <defaults>
</compile_context>

<pallas_src>
import numpy as np
import jax
import jax.numpy as jnp
from jax.experimental import pallas as pl
from jax.experimental.pallas import tpu as pltpu


_SHARE_UV = ("global", "row", "col", "none")

_BLOCK_BYTE_TARGET = 2 * 1024 * 1024   # ~2 MiB per f32 operand block
_MIN_BLOCK_BYTES = 1 * 1024 * 1024     # never shrink blocks below this
_MIN_GRID_STEPS = 8                    # expose work for both v7x TensorCores


# --------------------------------------------------------------------------
# kernels (pure VPU mul/add; cos/sin hoisted to the wrapper)
# --------------------------------------------------------------------------
def _ps_kernel_complex(c_ref, s_ref, xr_ref, xi_ref, or_ref, oi_ref):
    # c/s: (1, LT); x/o: (BT, LT).  The (1, LT) -> (BT, LT) broadcast is left
    # implicit so Mosaic keeps cos/sin as a lazily-replicated row instead of
    # materializing (BT, LT) temporaries (no vreg spills / extra vst slots).
    c = c_ref[...]
    s = s_ref[...]
    xr = xr_ref[...]
    xi = xi_ref[...]
    # complex multiply x * exp(i*theta) on planar data.
    or_ref[...] = xr * c - xi * s
    oi_ref[...] = xr * s + xi * c


def _ps_kernel_real(c_ref, s_ref, xr_ref, or_ref, oi_ref):
    # Real-valued input: the imaginary plane is identically zero, so it is
    # never materialized, streamed, or multiplied.
    xr = xr_ref[...]
    or_ref[...] = xr * c_ref[...]
    oi_ref[...] = xr * s_ref[...]


# --------------------------------------------------------------------------
# tiling helpers
# --------------------------------------------------------------------------
def _round_up(v, m):
    return -(-v // m) * m


def _round_down(v, m):
    return (v // m) * m


def _cdiv(a, b):
    return -(-a // b)


def _pick_tiles(B, M, *, block_byte_target=_BLOCK_BYTE_TARGET,
                min_block_bytes=_MIN_BLOCK_BYTES,
                min_grid_steps=_MIN_GRID_STEPS):
    """Choose (batch_tile, lane_tile) for the (B, M) float32 planes.

    * lane tile is a multiple of 128 (or the full M), batch tile a multiple
      of 8 (or the full B) -> legal Mosaic blocks, remainders masked.
    * targets ~`block_byte_target` bytes per operand block so the ~0.35us
      per-grid-step pipeline overhead is amortized even at v7x's 3.2 TB/s.
    * if the whole problem fits in fewer than `min_grid_steps` blocks, tiles
      shrink (never below `min_block_bytes`) so both v7x TensorCores get grid
      steps; tiny problems are left as a single block.
    """
    block_elems = block_byte_target // 4
    rows_min = B if B < 8 else 8

    if rows_min * M <= block_elems:
        lt = M                                     # full lane extent
    else:
        lt = max(128, min(_round_down(block_elems // rows_min, 128),
                          _round_down(M, 128)))

    bt_cap = max(rows_min, _round_up(max(1, block_elems // lt), 8))
    bt = B if B <= bt_cap else bt_cap

    def steps(bt_, lt_):
        return _cdiv(B, bt_) * _cdiv(M, lt_)

    while steps(bt, lt) < min_grid_steps:
        new_bt = _round_up(max(1, bt // 2), 8)
        new_lt = _round_up(max(1, lt // 2), 128)
        if new_bt < bt and new_bt * lt * 4 >= min_block_bytes:
            bt = new_bt            # split batch first: keeps cos/sin reuse
        elif new_lt < lt and bt * new_lt * 4 >= min_block_bytes:
            lt = new_lt
        else:
            break
    return bt, lt


# --------------------------------------------------------------------------
# phase expansion (transcendentals hoisted; computed on the compact weight)
# --------------------------------------------------------------------------
def _expand_phase(weight, share_uv, Y, X, N):
    """cos/sin on the COMPACT weight, broadcast/flattened to (1, Y*X*N)."""
    w = weight.astype(jnp.float32)
    c = jnp.cos(w)
    s = jnp.sin(w)
    if share_uv == "global":
        c = jnp.broadcast_to(c.reshape(1, 1, N), (Y, X, N))
        s = jnp.broadcast_to(s.reshape(1, 1, N), (Y, X, N))
    elif share_uv == "row":
        c = jnp.broadcast_to(c.reshape(Y, 1, N), (Y, X, N))
        s = jnp.broadcast_to(s.reshape(Y, 1, N), (Y, X, N))
    elif share_uv == "col":
        c = jnp.broadcast_to(c.reshape(1, X, N), (Y, X, N))
        s = jnp.broadcast_to(s.reshape(1, X, N), (Y, X, N))
    elif share_uv == "none":
        c = c.reshape(Y, X, N)
        s = s.reshape(Y, X, N)
    else:
        raise ValueError(f"Not supported share_uv: {share_uv}")
    M = Y * X * N
    return c.reshape(1, M), s.reshape(1, M)


# --------------------------------------------------------------------------
# forward (planar float32 interface — the production Pallas path)
# --------------------------------------------------------------------------
def super_batched_ps_forward_planar(x_re, x_im, weight, share_uv,
                                    grid_dim_y, grid_dim_x, n_waveguides,
                                    *, vmem_limit_bytes=48 * 1024 * 1024,
                                    alias_inputs=True):
    """Production entry point: planar float32 re/im planes in and out.

    Keeping re/im planar across adjacent layers avoids the un-fusable
    complex<->planar XLA glue around the custom call.  Pass `x_im=None` for a
    real-valued input (skips a full B*M read plane and the zeros fill).
    """
    share_uv = share_uv.lower()
    assert share_uv in _SHARE_UV, share_uv
    Y, X, N = grid_dim_y, grid_dim_x, n_waveguides
    M = Y * X * N
    B = x_re.shape[0]
    assert x_re.shape == (B, Y, X, N)
    has_imag = x_im is not None
    if has_imag:
        assert x_im.shape == (B, Y, X, N)

    cos_w, sin_w = _expand_phase(weight, share_uv, Y, X, N)   # (1, M) each

    # lane-dense flattening (contiguous reshape, no data movement).
    xr = x_re.astype(jnp.float32).reshape(B, M)
    xi = x_im.astype(jnp.float32).reshape(B, M) if has_imag else None

    # Small / non-128-multiple M: fold batch into the lane axis so stores are
    # unmasked full-lane `vst` instead of masked partial stores; the phase is
    # tiled across the batch (contiguous, matches the reshape layout).
    fold = (M % 128 != 0) and (M < 512) and (B > 1)
    if fold:
        xr = xr.reshape(1, B * M)
        if has_imag:
            xi = xi.reshape(1, B * M)
        cos_w = jnp.tile(cos_w, (1, B))
        sin_w = jnp.tile(sin_w, (1, B))
        Bp, Mp = 1, B * M
    else:
        Bp, Mp = B, M
    # TODO(synk): for huge B with tiny M a partial fold (repeat the phase only
    # lcm(M,128)//M times) would avoid tiling the phase across the whole batch.

    bt, lt = _pick_tiles(Bp, Mp)
    # lane tiles outer, batch tiles inner: the (1, lt) cos/sin block is
    # revisited across the inner batch axis and not re-DMA'd.
    grid = (_cdiv(Mp, lt), _cdiv(Bp, bt))

    x_spec = pl.BlockSpec((bt, lt), lambda li, bi: (bi, li))
    w_spec = pl.BlockSpec((1, lt), lambda li, bi: (0, li))   # batch bcast via index_map

    n_planes = 2 if has_imag else 1
    phase_elems = int(cos_w.size)
    cost = pl.CostEstimate(
        flops=(6 if has_imag else 2) * Bp * Mp,
        transcendentals=0,
        bytes_accessed=4 * ((n_planes + 2) * Bp * Mp + 2 * phase_elems),
    )

    # Pure elementwise overwrite: let the output planes reuse the input plane
    # buffers.  (Takes full effect when the inputs are donated / intermediates
    # under jit; XLA inserts a copy otherwise, so it is always safe.)
    aliases = {}
    if alias_inputs:
        aliases[2] = 0
        if has_imag:
            aliases[3] = 1

    kernel = _ps_kernel_complex if has_imag else _ps_kernel_real
    inputs = (cos_w, sin_w, xr, xi) if has_imag else (cos_w, sin_w, xr)
    in_specs = [w_spec, w_spec] + [x_spec] * n_planes

    out_r, out_i = pl.pallas_call(
        kernel,
        out_shape=(jax.ShapeDtypeStruct((Bp, Mp), jnp.float32),
                   jax.ShapeDtypeStruct((Bp, Mp), jnp.float32)),
        grid_spec=pltpu.PrefetchScalarGridSpec(
            num_scalar_prefetch=0,
            grid=grid,
            in_specs=in_specs,
            out_specs=[x_spec, x_spec],
        ),
        compiler_params=pltpu.CompilerParams(
            dimension_semantics=("parallel", "parallel"),
            vmem_limit_bytes=vmem_limit_bytes),
        cost_estimate=cost,
        input_output_aliases=aliases,
    )(*inputs)

    return out_r.reshape(B, Y, X, N), out_i.reshape(B, Y, X, N)


# --------------------------------------------------------------------------
# forward (complex interface — compatibility shim, module-faithful)
# --------------------------------------------------------------------------
def super_batched_ps_forward(x, weight, share_uv, grid_dim_y, grid_dim_x,
                             n_waveguides, *, phase_noise_std=0.0,
                             noise_key=None, **kwargs):
    """Pallas implementation of SuperBatchedPSLayer.forward (complex in/out).

    The real/imag split and lax.complex merge are separate HBM passes that
    cannot fuse across the custom-call boundary; prefer the planar entry
    point (`super_batched_ps_forward_planar`) in production pipelines.
    """
    share_uv = share_uv.lower()

    # build_weight(): optional phase noise added on the compact weight.
    if phase_noise_std > 0.0:
        if noise_key is None:
            raise ValueError("noise_key is required when phase_noise_std > 0")
        weight = weight.astype(jnp.float32) + phase_noise_std * jax.random.normal(
            noise_key, weight.shape, dtype=jnp.float32)

    if jnp.issubdtype(x.dtype, jnp.complexfloating):
        x = x.astype(jnp.complex64)
        xr, xi = jnp.real(x), jnp.imag(x)
    else:   # x.to(torch.cfloat): zero imaginary part -> 1-input kernel variant
        xr, xi = x.astype(jnp.float32), None

    out_r, out_i = super_batched_ps_forward_planar(
        xr, xi, weight, share_uv, grid_dim_y, grid_dim_x, n_waveguides,
        **kwargs)
    return jax.lax.complex(out_r, out_i)


# --------------------------------------------------------------------------
# init + reference + self-test
# --------------------------------------------------------------------------
def init_weight(key, share_uv, grid_dim_y, grid_dim_x, n_waveguides):
    """Deterministic init matching reset_parameters(alg='uniform'): U(-pi/2, pi)."""
    share_uv = share_uv.lower()
    if share_uv == "global":
        shape = (n_waveguides,)
    elif share_uv == "row":
        shape = (grid_dim_y, n_waveguides)
    elif share_uv == "col":
        shape = (grid_dim_x, n_waveguides)
    elif share_uv == "none":
        shape = (grid_dim_y, grid_dim_x, n_waveguides)
    else:
        raise ValueError(share_uv)
    return jax.random.uniform(key, shape, dtype=jnp.float32,
                              minval=-np.pi / 2, maxval=np.pi)


def _reference(x, weight, share_uv, Y, X, N):
    """Pure-JAX reference of the PyTorch forward."""
    if share_uv == "global":
        theta = jnp.broadcast_to(weight.reshape(1, 1, N), (Y, X, N))
    elif share_uv == "row":
        theta = jnp.broadcast_to(weight.reshape(Y, 1, N), (Y, X, N))
    elif share_uv == "col":
        theta = jnp.broadcast_to(weight.reshape(1, X, N), (Y, X, N))
    else:
        theta = weight.reshape(Y, X, N)
    return x.astype(jnp.complex64) * jnp.exp(1j * theta.astype(jnp.complex64))


if __name__ == "__main__":
    # small shapes consistent with the module
    B, Y, X, N = 2, 3, 4, 8   # batch, grid_dim_y, grid_dim_x, n_waveguides

    key = jax.random.PRNGKey(0)
    kre, kim, kw = jax.random.split(key, 3)
    x_re = jax.random.normal(kre, (B, Y, X, N), dtype=jnp.float32)
    x_im = jax.random.normal(kim, (B, Y, X, N), dtype=jnp.float32)
    x = jax.lax.complex(x_re, x_im)   # complex64 input

    ok = True
    for mode in ("global", "row", "col", "none"):
        w = init_weight(kw, mode, Y, X, N)

        # complex input (compat shim around the planar Pallas path)
        out = jax.block_until_ready(
            super_batched_ps_forward(x, w, mode, Y, X, N))
        ref = _reference(x, w, mode, Y, X, N)
        if not np.allclose(np.asarray(out), np.asarray(ref),
                           atol=1e-5, rtol=1e-5):
            ok = False
            print(f"mismatch (complex input) in mode {mode}")

        # real-valued input path (1-input / 2-output kernel variant)
        out_r = jax.block_until_ready(
            super_batched_ps_forward(x_re, w, mode, Y, X, N))
        ref_r = _reference(x_re, w, mode, Y, X, N)
        if not np.allclose(np.asarray(out_r), np.asarray(ref_r),
                           atol=1e-5, rtol=1e-5):
            ok = False
            print(f"mismatch (real input) in mode {mode}")

    # second shape with M a multiple of 128 (exercises the non-folded path)
    B2, Y2, X2, N2 = 4, 2, 2, 32   # M = 128
    x2_re = jax.random.normal(kre, (B2, Y2, X2, N2), dtype=jnp.float32)
    x2_im = jax.random.normal(kim, (B2, Y2, X2, N2), dtype=jnp.float32)
    x2 = jax.lax.complex(x2_re, x2_im)
    w2 = init_weight(kw, "none", Y2, X2, N2)
    out2 = jax.block_until_ready(
        super_batched_ps_forward(x2, w2, "none", Y2, X2, N2))
    ref2 = _reference(x2, w2, "none", Y2, X2, N2)
    if not np.allclose(np.asarray(out2), np.asarray(ref2),
                       atol=1e-5, rtol=1e-5):
        ok = False
        print("mismatch in lane-dense (M=128) case")

    if ok:
        print("KERNEL_OK")
</pallas_src>

<mosaic_0001>
module attributes {stable_mosaic.version = 11 : i64} {
  func.func @_ps_kernel_complex(%arg0: i32, %arg1: i32, %arg2: memref<1x192xf32, #tpu.memory_space<vmem>>, %arg3: memref<1x192xf32, #tpu.memory_space<vmem>>, %arg4: memref<1x192xf32, #tpu.memory_space<vmem>>, %arg5: memref<1x192xf32, #tpu.memory_space<vmem>>, %arg6: memref<1x192xf32, #tpu.memory_space<vmem>>, %arg7: memref<1x192xf32, #tpu.memory_space<vmem>>) attributes {dimension_semantics = [#tpu.dimension_semantics<parallel>, #tpu.dimension_semantics<parallel>], iteration_bounds = array<i64: 1, 1>, scalar_prefetch = 0 : i64, scratch_operands = 0 : i64, tpu.core_type = #tpu.core_type<tc>, window_params = [{transform_indices = @transform_0, window_bounds = array<i64: 1, 192>}, {transform_indices = @transform_1, window_bounds = array<i64: 1, 192>}, {transform_indices = @transform_2, window_bounds = array<i64: 1, 192>}, {transform_indices = @transform_3, window_bounds = array<i64: 1, 192>}, {transform_indices = @transform_4, window_bounds = array<i64: 1, 192>}, {transform_indices = @transform_5, window_bounds = array<i64: 1, 192>}]} {
    %c0 = arith.constant 0 : index
    %c0_0 = arith.constant 0 : index
    %0 = vector.load %arg2[%c0, %c0_0] : memref<1x192xf32, #tpu.memory_space<vmem>>, vector<1x192xf32>
    %c0_1 = arith.constant 0 : index
    %c0_2 = arith.constant 0 : index
    %1 = vector.load %arg3[%c0_1, %c0_2] : memref<1x192xf32, #tpu.memory_space<vmem>>, vector<1x192xf32>
    %c0_3 = arith.constant 0 : index
    %c0_4 = arith.constant 0 : index
    %2 = vector.load %arg4[%c0_3, %c0_4] : memref<1x192xf32, #tpu.memory_space<vmem>>, vector<1x192xf32>
    %c0_5 = arith.constant 0 : index
    %c0_6 = arith.constant 0 : index
    %3 = vector.load %arg5[%c0_5, %c0_6] : memref<1x192xf32, #tpu.memory_space<vmem>>, vector<1x192xf32>
    %4 = arith.mulf %2, %0 : vector<1x192xf32>
    %5 = arith.mulf %3, %1 : vector<1x192xf32>
    %6 = arith.subf %4, %5 : vector<1x192xf32>
    %c0_7 = arith.constant 0 : index
    %c0_8 = arith.constant 0 : index
    %7 = vector.load %arg6[%c0_7, %c0_8] : memref<1x192xf32, #tpu.memory_space<vmem>>, vector<1x192xf32>
    tpu.vector_store %arg6[%c0_7, %c0_8], %6 {strides = array<i32>} : memref<1x192xf32, #tpu.memory_space<vmem>>, vector<1x192xf32>,
    %8 = arith.mulf %2, %1 : vector<1x192xf32>
    %9 = arith.mulf %3, %0 : vector<1x192xf32>
    %10 = arith.addf %8, %9 : vector<1x192xf32>
    %c0_9 = arith.constant 0 : index
    %c0_10 = arith.constant 0 : index
    %11 = vector.load %arg7[%c0_9, %c0_10] : memref<1x192xf32, #tpu.memory_space<vmem>>, vector<1x192xf32>
    tpu.vector_store %arg7[%c0_9, %c0_10], %10 {strides = array<i32>} : memref<1x192xf32, #tpu.memory_space<vmem>>, vector<1x192xf32>,
    return
  }
  func.func @transform_0(%arg0: i32, %arg1: i32) -> (i32, i32) {
    %c0_i32 = arith.constant 0 : i32
    %c0_i32_0 = arith.constant 0 : i32
    return %c0_i32, %arg0 : i32, i32
  }
  func.func @transform_1(%arg0: i32, %arg1: i32) -> (i32, i32) {
    %c0_i32 = arith.constant 0 : i32
    %c0_i32_0 = arith.constant 0 : i32
    return %c0_i32, %arg0 : i32, i32
  }
  func.func @transform_2(%arg0: i32, %arg1: i32) -> (i32, i32) {
    %c0_i32 = arith.constant 0 : i32
    return %arg1, %arg0 : i32, i32
  }
  func.func @transform_3(%arg0: i32, %arg1: i32) -> (i32, i32) {
    %c0_i32 = arith.constant 0 : i32
    return %arg1, %arg0 : i32, i32
  }
  func.func @transform_4(%arg0: i32, %arg1: i32) -> (i32, i32) {
    %c0_i32 = arith.constant 0 : i32
    return %arg1, %arg0 : i32, i32
  }
  func.func @transform_5(%arg0: i32, %arg1: i32) -> (i32, i32) {
    %c0_i32 = arith.constant 0 : i32
    return %arg1, %arg0 : i32, i32
  }
}

</mosaic_0001>

<bundles_post_ra>
// kernel: tpu_custom_call.1
= control target key start
LH: loop header
LB: loop body
LE: loop exit
PB: predicated region body
PF: predicated region fallthrough
CT: control target
= control target key end

     0   :  { %11 = vsyncpa [#allocation3], 0  ;;  %s279_s0 = inlined_call_operand.vmem [shape: f32[1,192], index: 0, kind: input, shape index: {}]   ;;  %s280_s1 = inlined_call_operand.vmem [shape: f32[1,192], index: 1, kind: input, shape index: {}]   ;;  %s281_s2 = inlined_call_operand.hbm [shape: f32[1,192], index: 2, kind: input, shape index: {}, may-alias: {2,4}]   ;;  %s282_s3 = inlined_call_operand.hbm [shape: f32[1,192], index: 3, kind: input, shape index: {}, may-alias: {3,5}]   ;;  %s283_s4 = inlined_call_operand.hbm [shape: f32[1,192], index: 4, kind: output, shape index: {0}, may-alias: {2,4}]   ;;  %s284_s5 = inlined_call_operand.hbm [shape: f32[1,192], index: 5, kind: output, shape index: {1}, may-alias: {3,5}]  }
   0x1   :  { %12 = vsyncpa [#allocation6], 0 }
   0x2   :  { %13 = vsyncpa [#allocation4], 0 }
   0x3   :  { %14 = vsyncpa [#allocation9], 0  ;;  %s191_s18 = smov [#allocation2]   ;;  %s192_s20 = smov [#allocation5]  }
   0x4   :  { %s25_s19 = sshll.u32 %s191_s18, 4  ;;  %s35_s21 = sshll.u32 %s192_s20, 4  ;;  %s26_s19 = int_to_ptr.vmem [resolvable:$true] %s25_s19  ;;  %s36_s21 = int_to_ptr.vmem [resolvable:$true] %s35_s21 }
   0x5   :  { %s95_s24 = scalar_lea.hbm %s281_s2, 32 }
   0x6   :  { %p96_p0 = scmp.ne.s32.totalorder %s281_s2, %s95_s24  ;;  %p99_p1 = scmp.lt.u32.totalorder %s95_s24, %s281_s2 }
   0x8   :  { %p101_p2 = pnand %p99_p1, %p96_p0 }
   0xa   :  { %104 = shalt.err (!%p101_p2)
}
   0xb   :  { %s105_s29 = scalar_lea.vmem %s26_s19, 32  ;;  %p110_p4 = scmp.lt.s32.totalorder %s26_s19, %s26_s19 }
   0xc   :  { %p106_p3 = scmp.ne.s32.totalorder %s26_s19, %s105_s29  ;;  %p111_p5 = scmp.lt.s32.totalorder %s105_s29, %s105_s29 }
   0xe   :  { %p112_p6 = por %p111_p5, %p110_p4 }
  0x10   :  { %p113_p7 = pnand %p112_p6, %p106_p3 }
  0x12   :  { %116 = shalt.err (!%p113_p7)
}
  0x13   :  { %28 = dma.hbm_to_vmem [thread:$0]  %s281_s2, 32, %s26_s19, [#allocation3]  }
  0x14   :  { %s117_s9 = scalar_lea.hbm %s282_s3, 32 }
  0x15   :  { %p118_p8 = scmp.ne.s32.totalorder %s282_s3, %s117_s9  ;;  %p121_p9 = scmp.lt.u32.totalorder %s117_s9, %s282_s3 }
  0x17   :  { %p123_p10 = pnand %p121_p9, %p118_p8 }
  0x19   :  { %126 = shalt.err (!%p123_p10)
}
  0x1a   :  { %s127_s14 = scalar_lea.vmem %s36_s21, 32  ;;  %p132_p12 = scmp.lt.s32.totalorder %s36_s21, %s36_s21 }
  0x1b   :  { %p128_p11 = scmp.ne.s32.totalorder %s36_s21, %s127_s14  ;;  %p133_p13 = scmp.lt.s32.totalorder %s127_s14, %s127_s14 }
  0x1d   :  { %p134_p0 = por %p133_p13, %p132_p12 }
  0x1f   :  { %p135_p1 = pnand %p134_p0, %p128_p11 }
  0x21   :  { %138 = shalt.err (!%p135_p1)
}
  0x22   :  { %38 = dma.hbm_to_vmem [thread:$0]  %s282_s3, 32, %s36_s21, [#allocation6]  }
  0x23   :  { %183 = dma.done.wait [#allocation3], 32  }
  0x24   :  { %184 = vsyncadd [#allocation3], 4294967264 }
  0x25   :  { %185 = dma.done.wait [#allocation6], 32  }
  0x26   :  { %186 = vsyncadd [#allocation6], 4294967264  ;;  %v52_v0 = vlaneseq  ;;  %v45_v1 = vld [vmem:[%s279_s0] sm:$0x3]  ;;  %v48_v4 = vld [vmem:[#allocation5] sm:$0x3] }
  0x27   :  { %v46_v2 = vld [vmem:[%s280_s1] sm:$0x3]  ;;  %s193_s20 = smov [#allocation7]   ;;  %v58_v8 = vmul.f32 %v48_v4, %v45_v1  ;;  %s194_s3 = smov [#allocation8]  }
  0x28   :  { %v47_v3 = vld [vmem:[#allocation2] sm:$0x3]  ;;  %s67_s22 = sshll.u32 %s193_s20, 4  ;;  %v50_v7 = vmul.f32 %v48_v4, %v46_v2  ;;  %s77_s21 = sshll.u32 %s194_s3, 4  ;;  %vm54_vm0 = vcmp.lt.s32.totalorder %v52_v0, 192  ;;  %s68_s22 = int_to_ptr.vmem [resolvable:$true] %s67_s22  ;;  %s78_s21 = int_to_ptr.vmem [resolvable:$true] %s77_s21 }
  0x29   :  { %v49_v5 = vmul.f32 %v47_v3, %v45_v1  ;;  %v57_v6 = vmul.f32 %v47_v3, %v46_v2  ;;  %s139_s0 = scalar_lea.vmem %s68_s22, 32  ;;  %p144_p3 = scmp.lt.s32.totalorder %s68_s22, %s68_s22 }
  0x2a   :  { %p140_p2 = scmp.ne.s32.totalorder %s68_s22, %s139_s0  ;;  %p145_p4 = scmp.lt.s32.totalorder %s139_s0, %s139_s0 }
  0x2b   :  { %v51_v9 = vsub.f32 %v49_v5, %v50_v7  ;;  %v59_v10 = vadd.f32 %v58_v8, %v57_v6 }
  0x2c   :  { %p146_p5 = por %p145_p4, %p144_p3 }
  0x2d   :  { %56 = vst.msk [vmem:[#allocation7] sm:$0x3] %vm54_vm0, %v51_v9  ;;  %60 = vst.msk [vmem:[#allocation8] sm:$0x3] %vm54_vm0, %v59_v10 }
  0x2e   :  { %p147_p6 = pnand %p146_p5, %p140_p2 }
  0x30   :  { %150 = shalt.err (!%p147_p6)
}
  0x31   :  { %s151_s24 = scalar_lea.hbm %s283_s4, 32 }
  0x32   :  { %p152_p7 = scmp.ne.s32.totalorder %s283_s4, %s151_s24  ;;  %p155_p8 = scmp.lt.u32.totalorder %s151_s24, %s283_s4 }
  0x34   :  { %p157_p9 = pnand %p155_p8, %p152_p7 }
  0x36   :  { %160 = shalt.err (!%p157_p9)
}
  0x37   :  { %70 = dma.vmem_to_hbm [thread:$0]  %s68_s22, 32, %s283_s4, [#allocation4]  }
  0x38   :  { %s161_s6 = scalar_lea.vmem %s78_s21, 32  ;;  %p166_p11 = scmp.lt.s32.totalorder %s78_s21, %s78_s21 }
  0x39   :  { %p162_p10 = scmp.ne.s32.totalorder %s78_s21, %s161_s6  ;;  %p167_p12 = scmp.lt.s32.totalorder %s161_s6, %s161_s6 }
  0x3b   :  { %p168_p13 = por %p167_p12, %p166_p11 }
  0x3d   :  { %p169_p0 = pnand %p168_p13, %p162_p10 }
  0x3f   :  { %172 = shalt.err (!%p169_p0)
}
  0x40   :  { %s173_s9 = scalar_lea.hbm %s284_s5, 32 }
  0x41   :  { %p174_p1 = scmp.ne.s32.totalorder %s284_s5, %s173_s9  ;;  %p177_p2 = scmp.lt.u32.totalorder %s173_s9, %s284_s5 }
  0x43   :  { %p179_p3 = pnand %p177_p2, %p174_p1 }
  0x45   :  { %182 = shalt.err (!%p179_p3)
}
  0x46   :  { %80 = dma.vmem_to_hbm [thread:$0]  %s78_s21, 32, %s284_s5, [#allocation9]  }
  0x47   :  { %187 = dma.done.wait [#allocation4], 32  }
  0x48   :  { %188 = vsyncadd [#allocation4], 4294967264 }
  0x49   :  { %189 = dma.done.wait [#allocation9], 32  }
  0x4a   :  { %190 = vsyncadd [#allocation9], 4294967264 }
  0x4b   :  { %87 = vsyncpa [#allocation3], 1 }
  0x4c   :  { %88 = vsyncpa [#allocation6], 1 }
  0x4d   :  { %89 = vsyncpa [#allocation4], 1 }
  0x4e   :  { %90 = vsyncpa [#allocation9], 1 }

</bundles_post_ra>
